<compile_context>
chip_gen: v5e
topology: v5e:2x2
jax: 0.10.0
libtpu: 0.0.40
codegen_flags: <defaults>
</compile_context>

<pallas_src>
import math

import jax
import jax.numpy as jnp
from jax.experimental import pallas as pl
from jax.experimental.pallas import tpu as pltpu


def _cdiv(a, m):
    return -(-a // m)


def _round_up(a, m):
    return _cdiv(a, m) * m


def _make_argmax_kernel(c_total, tc):
    """Builds the kernel for blocks x:(TB,TC,TS) -> o:(TB,TS) int32.

    Grid axis 2 walks the class dimension; best value / best index are carried
    across class blocks in VMEM scratch (init at k==0, store at k==last).
    """

    def kernel(x_ref, o_ref, bv_ref, bi_ref):
        ck = pl.program_id(2)
        val_dtype = bv_ref.dtype
        is_float = jnp.issubdtype(val_dtype, jnp.floating)
        init = -jnp.inf if is_float else jnp.iinfo(val_dtype).min

        @pl.when(ck == 0)
        def _():
            bv_ref[...] = jnp.full(bv_ref.shape, init, dtype=val_dtype)
            bi_ref[...] = jnp.zeros(bi_ref.shape, dtype=jnp.int32)

        best_val = bv_ref[...]
        best_idx = bi_ref[...]
        base = ck * tc
        partial = (c_total % tc) != 0

        # TODO(synk): if bundle dumps show per-class sublane gathers for
        # x_ref[:, k, :], switch to the in-layout sublane tree-reduce
        # (dense compare-select across class-sublane tiles + pltpu.roll).
        for k in range(tc):
            v = x_ref[:, k, :]
            # keep == "do NOT take class k".  Equivalent to the original
            # take = (v > best) | (isnan(v) & ~isnan(best)) mask (first maximal
            # index on ties, NaN propagates as the max), in fewer VPU ops.
            keep = v <= best_val
            if is_float:
                keep = keep | jnp.isnan(best_val)
            if partial:
                # Mask padded classes of the (only possibly partial) last block.
                keep = keep | (base + k >= c_total)
            best_val = jnp.where(keep, best_val, v)
            best_idx = jnp.where(keep, best_idx, base + k)

        bv_ref[...] = best_val
        bi_ref[...] = best_idx

        @pl.when(ck == pl.num_programs(2) - 1)
        def _():
            o_ref[...] = best_idx

    return kernel


def _argmax_over_classes(x3):
    """x3: (B, C, S) -> (B, S) int32 argmax along the class axis (axis 1)."""
    b, c, s = x3.shape
    dtype = jnp.dtype(x3.dtype)
    elem_bytes = dtype.itemsize

    # Sublane packing of the class dim inside a VMEM tile
    # (f32 -> 8, bf16 -> 16, int8 -> 32).
    pack = max(8, 32 // max(1, elem_bytes))

    # Batch tile: 8 (or full batch); the partial final batch block is masked,
    # so no b % 8 guard is needed.
    tb = min(b, 8)
    # Class tile: bounded unroll.  64 is divisible by 8, so it is layout-legal
    # even when it does not divide c (padded classes masked in-kernel).
    tc = c if c <= 64 else 64
    tc_pad = _round_up(tc, pack)  # what the VMEM tile really occupies

    # Per-generation VMEM budget (v5e/v6e: 128 MiB physical, v7x: 64 MiB).
    try:
        vmem_cap = int(pltpu.get_tpu_info().vmem_capacity_bytes)
    except Exception:
        vmem_cap = 64 * 1024 * 1024  # conservative: assume the smallest (v7x)
    vmem_limit = min((vmem_cap * 3) // 4, 96 * 1024 * 1024)
    # ~2x double-buffered *padded* input tiles + output + scratch headroom.
    target_block_bytes = max(2 * 1024 * 1024, vmem_limit // 6)

    # Spatial (lane) tile: multiple of 128, sized from the PADDED input block.
    bytes_per_lane = tb * tc_pad * elem_bytes
    ts_raw = ((target_block_bytes // bytes_per_lane) // 128) * 128
    if s <= 128 or ts_raw >= s:
        ts = s  # full spatial extent in one block (always layout-legal)
    else:
        ts = max(128, ts_raw)  # never fall back to a giant single block

    # v7x megacore: keep >= 2 blocks along a parallel axis for medium inputs
    # that would otherwise fit a single (1, 1) grid.
    if _cdiv(b, tb) == 1 and ts == s and s >= 1024:
        ts = _round_up(_cdiv(s, 2), 128)

    grid = (_cdiv(b, tb), _cdiv(s, ts), _cdiv(c, tc))

    kernel = _make_argmax_kernel(c, tc)
    cost = pl.CostEstimate(
        flops=5 * b * c * s,
        transcendentals=0,
        bytes_accessed=b * c * s * elem_bytes + b * s * 4,
    )

    return pl.pallas_call(
        kernel,
        out_shape=jax.ShapeDtypeStruct((b, s), jnp.int32),
        grid_spec=pltpu.PrefetchScalarGridSpec(
            num_scalar_prefetch=0,
            grid=grid,
            in_specs=[pl.BlockSpec((tb, tc, ts), lambda i, j, k: (i, k, j))],
            out_specs=pl.BlockSpec((tb, ts), lambda i, j, k: (i, j)),
            scratch_shapes=[
                pltpu.VMEM((tb, ts), dtype),      # running best value
                pltpu.VMEM((tb, ts), jnp.int32),  # running best index
            ],
        ),
        compiler_params=pltpu.CompilerParams(
            dimension_semantics=("parallel", "parallel", "arbitrary"),
            vmem_limit_bytes=vmem_limit,
        ),
        cost_estimate=cost,
    )(x3)


def index_classifier_forward(x):
    """Equivalent of IndexClassifier.forward: argmax over axis 1.

    x: array of rank >= 2, shape (B, C, ...). Returns int32 indices of shape
    (B, ...) (class axis removed), matching torch.max(x, 1)[1].
    (Output dtype is int32; torch returns int64 — fine on TPU.)
    """
    if x.ndim < 2:
        raise ValueError("IndexClassifier expects rank >= 2 input (B, C, ...)")
    b, c = x.shape[0], x.shape[1]
    spatial = x.shape[2:]
    s = math.prod(spatial) if spatial else 1
    # Contiguous reshape only — no moveaxis/transpose, no pad, no extra HBM pass.
    x3 = x.reshape(b, c, s)
    preds = _argmax_over_classes(x3)  # (B, S) int32
    return preds.reshape((b,) + spatial)


if __name__ == "__main__":
    key = jax.random.PRNGKey(0)
    # Small NCHW logits: batch=2, classes=4, spatial=16x16
    x = jax.random.normal(key, (2, 4, 16, 16), dtype=jnp.float32)

    preds = index_classifier_forward(x)
    preds = jax.block_until_ready(preds)

    # Reference check against plain-JAX argmax (same semantics as torch.max dim=1).
    ref = jnp.argmax(x, axis=1).astype(jnp.int32)
    assert preds.shape == ref.shape, (preds.shape, ref.shape)
    assert bool(jnp.all(preds == ref)), "mismatch vs reference argmax"

    print("KERNEL_OK")
</pallas_src>

<mosaic_0001>
module attributes {stable_mosaic.version = 11 : i64} {
  func.func @kernel(%arg0: i32, %arg1: i32, %arg2: i32, %arg3: memref<2x4x256xf32, #tpu.memory_space<vmem>>, %arg4: memref<2x256xi32, #tpu.memory_space<vmem>>, %arg5: memref<2x256xf32, #tpu.memory_space<vmem>>, %arg6: memref<2x256xi32, #tpu.memory_space<vmem>>) attributes {dimension_semantics = [#tpu.dimension_semantics<parallel>, #tpu.dimension_semantics<parallel>, #tpu.dimension_semantics<arbitrary>], iteration_bounds = array<i64: 1, 1, 1>, scalar_prefetch = 0 : i64, scratch_operands = 2 : i64, tpu.core_type = #tpu.core_type<tc>, window_params = [{transform_indices = @transform_0, window_bounds = array<i64: 2, 4, 256>}, {transform_indices = @transform_1, window_bounds = array<i64: 2, 256>}]} {
    %c0_i32 = arith.constant 0 : i32
    %0 = arith.cmpi eq, %arg2, %c0_i32 : i32
    %1 = arith.extui %0 : i1 to i32
    %c0_i32_0 = arith.constant 0 : i32
    %2 = arith.cmpi ne, %1, %c0_i32_0 : i32
    scf.if %2 {
      %cst = arith.constant 0xFF800000 : f32
      %47 = vector.broadcast %cst : f32 to vector<2x256xf32>
      %c0_20 = arith.constant 0 : index
      %c0_21 = arith.constant 0 : index
      %48 = vector.load %arg5[%c0_20, %c0_21] : memref<2x256xf32, #tpu.memory_space<vmem>>, vector<2x256xf32>
      tpu.vector_store %arg5[%c0_20, %c0_21], %47 {strides = array<i32>} : memref<2x256xf32, #tpu.memory_space<vmem>>, vector<2x256xf32>,
      %c0_i32_22 = arith.constant 0 : i32
      %49 = vector.broadcast %c0_i32_22 : i32 to vector<2x256xi32>
      %c0_23 = arith.constant 0 : index
      %c0_24 = arith.constant 0 : index
      %50 = vector.load %arg6[%c0_23, %c0_24] : memref<2x256xi32, #tpu.memory_space<vmem>>, vector<2x256xi32>
      tpu.vector_store %arg6[%c0_23, %c0_24], %49 {strides = array<i32>} : memref<2x256xi32, #tpu.memory_space<vmem>>, vector<2x256xi32>,
    } else {
    }
    %c0 = arith.constant 0 : index
    %c0_1 = arith.constant 0 : index
    %3 = vector.load %arg5[%c0, %c0_1] : memref<2x256xf32, #tpu.memory_space<vmem>>, vector<2x256xf32>
    %c0_2 = arith.constant 0 : index
    %c0_3 = arith.constant 0 : index
    %4 = vector.load %arg6[%c0_2, %c0_3] : memref<2x256xi32, #tpu.memory_space<vmem>>, vector<2x256xi32>
    %c4_i32 = arith.constant 4 : i32
    %5 = arith.muli %arg2, %c4_i32 : i32
    %c0_4 = arith.constant 0 : index
    %c0_5 = arith.constant 0 : index
    %c0_6 = arith.constant 0 : index
    %6 = vector.load %arg3[%c0_4, %c0_5, %c0_6] : memref<2x4x256xf32, #tpu.memory_space<vmem>>, vector<2x1x256xf32>
    %7 = vector.shape_cast %6 : vector<2x1x256xf32> to vector<2x256xf32>
    %8 = arith.cmpf ole, %7, %3 : vector<2x256xf32>
    %9 = arith.cmpf one, %3, %3 : vector<2x256xf32>
    %10 = arith.ori %8, %9 : vector<2x256xi1>
    %11 = arith.select %10, %3, %7 : vector<2x256xi1>, vector<2x256xf32>
    %c0_i32_7 = arith.constant 0 : i32
    %12 = arith.addi %5, %c0_i32_7 : i32
    %13 = vector.broadcast %12 : i32 to vector<2x256xi32>
    %14 = arith.select %10, %4, %13 : vector<2x256xi1>, vector<2x256xi32>
    %c0_8 = arith.constant 0 : index
    %c1 = arith.constant 1 : index
    %c0_9 = arith.constant 0 : index
    %15 = vector.load %arg3[%c0_8, %c1, %c0_9] : memref<2x4x256xf32, #tpu.memory_space<vmem>>, vector<2x1x256xf32>
    %16 = vector.shape_cast %15 : vector<2x1x256xf32> to vector<2x256xf32>
    %17 = arith.cmpf ole, %16, %11 : vector<2x256xf32>
    %18 = arith.cmpf one, %11, %11 : vector<2x256xf32>
    %19 = arith.ori %17, %18 : vector<2x256xi1>
    %20 = arith.select %19, %11, %16 : vector<2x256xi1>, vector<2x256xf32>
    %c1_i32 = arith.constant 1 : i32
    %21 = arith.addi %5, %c1_i32 : i32
    %22 = vector.broadcast %21 : i32 to vector<2x256xi32>
    %23 = arith.select %19, %14, %22 : vector<2x256xi1>, vector<2x256xi32>
    %c0_10 = arith.constant 0 : index
    %c2 = arith.constant 2 : index
    %c0_11 = arith.constant 0 : index
    %24 = vector.load %arg3[%c0_10, %c2, %c0_11] : memref<2x4x256xf32, #tpu.memory_space<vmem>>, vector<2x1x256xf32>
    %25 = vector.shape_cast %24 : vector<2x1x256xf32> to vector<2x256xf32>
    %26 = arith.cmpf ole, %25, %20 : vector<2x256xf32>
    %27 = arith.cmpf one, %20, %20 : vector<2x256xf32>
    %28 = arith.ori %26, %27 : vector<2x256xi1>
    %29 = arith.select %28, %20, %25 : vector<2x256xi1>, vector<2x256xf32>
    %c2_i32 = arith.constant 2 : i32
    %30 = arith.addi %5, %c2_i32 : i32
    %31 = vector.broadcast %30 : i32 to vector<2x256xi32>
    %32 = arith.select %28, %23, %31 : vector<2x256xi1>, vector<2x256xi32>
    %c0_12 = arith.constant 0 : index
    %c3 = arith.constant 3 : index
    %c0_13 = arith.constant 0 : index
    %33 = vector.load %arg3[%c0_12, %c3, %c0_13] : memref<2x4x256xf32, #tpu.memory_space<vmem>>, vector<2x1x256xf32>
    %34 = vector.shape_cast %33 : vector<2x1x256xf32> to vector<2x256xf32>
    %35 = arith.cmpf ole, %34, %29 : vector<2x256xf32>
    %36 = arith.cmpf one, %29, %29 : vector<2x256xf32>
    %37 = arith.ori %35, %36 : vector<2x256xi1>
    %38 = arith.select %37, %29, %34 : vector<2x256xi1>, vector<2x256xf32>
    %c3_i32 = arith.constant 3 : i32
    %39 = arith.addi %5, %c3_i32 : i32
    %40 = vector.broadcast %39 : i32 to vector<2x256xi32>
    %41 = arith.select %37, %32, %40 : vector<2x256xi1>, vector<2x256xi32>
    %c0_14 = arith.constant 0 : index
    %c0_15 = arith.constant 0 : index
    %42 = vector.load %arg5[%c0_14, %c0_15] : memref<2x256xf32, #tpu.memory_space<vmem>>, vector<2x256xf32>
    tpu.vector_store %arg5[%c0_14, %c0_15], %38 {strides = array<i32>} : memref<2x256xf32, #tpu.memory_space<vmem>>, vector<2x256xf32>,
    %c0_16 = arith.constant 0 : index
    %c0_17 = arith.constant 0 : index
    %43 = vector.load %arg6[%c0_16, %c0_17] : memref<2x256xi32, #tpu.memory_space<vmem>>, vector<2x256xi32>
    tpu.vector_store %arg6[%c0_16, %c0_17], %41 {strides = array<i32>} : memref<2x256xi32, #tpu.memory_space<vmem>>, vector<2x256xi32>,
    %c0_i32_18 = arith.constant 0 : i32
    %44 = arith.cmpi eq, %arg2, %c0_i32_18 : i32
    %45 = arith.extui %44 : i1 to i32
    %c0_i32_19 = arith.constant 0 : i32
    %46 = arith.cmpi ne, %45, %c0_i32_19 : i32
    scf.if %46 {
      %c0_20 = arith.constant 0 : index
      %c0_21 = arith.constant 0 : index
      %47 = vector.load %arg4[%c0_20, %c0_21] : memref<2x256xi32, #tpu.memory_space<vmem>>, vector<2x256xi32>
      tpu.vector_store %arg4[%c0_20, %c0_21], %41 {strides = array<i32>} : memref<2x256xi32, #tpu.memory_space<vmem>>, vector<2x256xi32>,
    } else {
    }
    return
  }
  func.func @transform_0(%arg0: i32, %arg1: i32, %arg2: i32) -> (i32, i32, i32) {
    %c0_i32 = arith.constant 0 : i32
    return %arg0, %arg2, %arg1 : i32, i32, i32
  }
  func.func @transform_1(%arg0: i32, %arg1: i32, %arg2: i32) -> (i32, i32) {
    %c0_i32 = arith.constant 0 : i32
    return %arg0, %arg1 : i32, i32
  }
}

</mosaic_0001>

<bundles_post_ra>
// kernel: tpu_custom_call.1
= control target key start
LH: loop header
LB: loop body
LE: loop exit
PB: predicated region body
PF: predicated region fallthrough
CT: control target
= control target key end

     0   :  { %6 = vsyncpa [#allocation5], 0  ;;  %s351_s0 = inlined_call_operand.hbm [shape: f32[2,4,256], index: 0, kind: input, shape index: {}]   ;;  %s352_s1 = inlined_call_operand.hbm [shape: s32[2,256], index: 1, kind: output, shape index: {}]  }
   0x1   :  { %7 = vsyncpa [#allocation6], 0  ;;  %s12_s8 = sshll.u32 %s351_s0, 4  ;;  %s233_s9 = smov [#allocation4]   ;;  %s13_s8 = int_to_ptr.hbm [resolvable:$true] %s12_s8 }
   0x2   :  { %s14_s10 = sshll.u32 %s233_s9, 4  ;;  %s234_s11 = smov 128   ;;  %s15_s10 = int_to_ptr.vmem [resolvable:$true] %s14_s10 }
   0x3   :  { %s235_s12 = smov 8  }
   0x4   :  { %20 = dma.hbm_to_vmem [thread:$0]  %s13_s8, 256, %s15_s10, [#allocation5], %s234_s11, %s234_s11, %s235_s12  }
   0x5   :  { %229 = dma.done.wait [#allocation5], 256  }
   0x6   :  { %230 = vsyncadd [#allocation5], 4294967040  ;;  %v236_v0 = vmov -inf   ;;  %v237_v1 = vmov 0   ;;  %vm357_vm0 = vcmask 1040384   ;;  %vm356_vm1 = vcmask 1042434  }
   0x7   :  { %29 = vst [vmem:[#allocation2] sm:$0xf] %v236_v0  ;;  %vm47_vm2 = vcmask 1041409   ;;  %vm49_vm3 = vcmask 1043459   ;;  %vm353_vm5 = vcmask 1041408   ;;  %vm355_vm6 = vcmask 1042433  }
   0x8   :  { %30 = vst [vmem:[#allocation3] sm:$0xf] %v237_v1  ;;  %v34_v11 = vld [vmem:[#allocation4] ss:$4 sm:$0x3]  ;;  %s238_s0 = smov [#allocation7]  }
   0x9   :  { %v36_v22 = vld [vmem:[#allocation4 + $0x8] ss:$4 sm:$0x3]  ;;  %v90_v25 = vld [vmem:[#allocation4 + $0x1] ss:$4 sm:$0x3] }
   0xa   :  { %v92_v31 = vld [vmem:[#allocation4 + $0x9] ss:$4 sm:$0x3]  ;;  %v106_v33 = vld [vmem:[#allocation4 + $0x2] ss:$4 sm:$0x3] }
   0xb   :  { %v108_v37 = vld [vmem:[#allocation4 + $0xa] ss:$4 sm:$0x3]  ;;  %v122_v39 = vld [vmem:[#allocation4 + $0x3] ss:$4 sm:$0x3] }
   0xc   :  { %v124_v46 = vld [vmem:[#allocation4 + $0xb] ss:$4 sm:$0x3]  ;;  %s163_s13 = sshll.u32 %s238_s0, 4  ;;  %s165_s16 = sshll.u32 %s352_s1, 4  ;;  %s164_s13 = int_to_ptr.vmem [resolvable:$true] %s163_s13  ;;  %s166_s16 = int_to_ptr.hbm [resolvable:$true] %s165_s16 }
   0xe   :  { %v31_v2 = vld [vmem:[#allocation2] sm:$0xf] }
   0xf   :  { %v38_v3 = vrot.slane %v31_v2, 1  ;;  %vm58_vm4 = vcmp.ne.f32.partialorder %v31_v2, %v31_v2  ;;  %v39_v4 = vrot.slane %v31_v2, 2  ;;  %v40_v5 = vrot.slane %v31_v2, 3  ;;  %v32_v32 = vld [vmem:[#allocation3] sm:$0xf] }
  0x10   :  { %v59_v6 = vsel %vm58_vm4, 1, %v237_v1  ;;  %v77_v38 = vrot.slane %v32_v32, 1  ;;  %v78_v41 = vrot.slane %v32_v32, 2  ;;  %v79_v42 = vrot.slane %v32_v32, 3 }
  0x11   :  { %v48_v7 = vsel %vm47_vm2, %v31_v2, %v38_v3  ;;  %v60_v8 = vrot.slane %v59_v6, 1  ;;  %v61_v9 = vrot.slane %v59_v6, 2  ;;  %v62_v10 = vrot.slane %v59_v6, 3 }
  0x12   :  { %v42_v12 = vsel %vm357_vm0, %v31_v2, %v38_v3  ;;  %v44_v13 = vsel %vm356_vm1, %v39_v4, %v40_v5  ;;  %v50_v14 = vsel %vm49_vm3, %v39_v4, %v40_v5  ;;  %v83_v50 = vsel %vm47_vm2, %v32_v32, %v77_v38 }
  0x13   :  { %v63_v15 = vsel %vm357_vm0, %v59_v6, %v60_v8  ;;  %v64_v16 = vsel %vm356_vm1, %v61_v9, %v62_v10  ;;  %v66_v17 = vsel %vm47_vm2, %v59_v6, %v60_v8  ;;  %v67_v18 = vsel %vm49_vm3, %v61_v9, %v62_v10 }
  0x14   :  { %v65_v19 = vsel %vm353_vm5, %v63_v15, %v64_v16  ;;  %v68_v20 = vsel %vm355_vm6, %v66_v17, %v67_v18  ;;  %v46_v21 = vsel %vm353_vm5, %v42_v12, %v44_v13  ;;  %v52_v23 = vsel %vm355_vm6, %v48_v7, %v50_v14 }
  0x15   :  { %v69_v24 = vrot.slane %v68_v20, 1  ;;  %vm70_vm7 = vcmp.ne.s32.totalorder %v65_v19, 0  ;;  %vm56_vm8 = vcmp.le.f32.partialorder %v34_v11, %v46_v21  ;;  %v53_v26 = vrot.slane %v52_v23, 1 }
  0x16   :  { %vm264_vm9 = vmor %vm56_vm8, %vm70_vm7  ;;  %v84_v51 = vsel %vm49_vm3, %v78_v41, %v79_v42  ;;  %vm378_vm2 = vcmask 1042433   ;;  %vm379_vm3 = vcmask 1041408  }
  0x17   :  { %v74_v28 = vsel %vm264_vm9, %v46_v21, %v34_v11  ;;  %vm270_vm10 = vcmp.le.f32.partialorder %v36_v22, %v53_v26  ;;  %vm274_vm11 = vcmp.ne.s32.totalorder %v69_v24, 0  ;;  %v85_v57 = vsel %vm378_vm2, %v83_v50, %v84_v51 }
  0x18   :  { %vm93_vm12 = vcmp.le.f32.partialorder %v90_v25, %v74_v28  ;;  %vm95_vm13 = vcmp.ne.f32.partialorder %v74_v28, %v74_v28  ;;  %vm354_vm14 = vmor %vm270_vm10, %vm274_vm11  ;;  %v86_v59 = vrot.slane %v85_v57, 1 }
  0x19   :  { %vm282_vm15 = vmor %vm93_vm12, %vm95_vm13  ;;  %v75_v35 = vsel %vm354_vm14, %v53_v26, %v36_v22 }
  0x1a   :  { %v99_v36 = vsel %vm282_vm15, %v74_v28, %v90_v25  ;;  %vm94_vm4 = vcmp.le.f32.partialorder %v92_v31, %v75_v35  ;;  %vm96_vm7 = vcmp.ne.f32.partialorder %v75_v35, %v75_v35 }
  0x1b   :  { %vm109_vm8 = vcmp.le.f32.partialorder %v106_v33, %v99_v36  ;;  %vm111_vm5 = vcmp.ne.f32.partialorder %v99_v36, %v99_v36  ;;  %vm293_vm12 = vmor %vm94_vm4, %vm96_vm7 }
  0x1c   :  { %vm297_vm13 = vmor %vm109_vm8, %vm111_vm5  ;;  %v100_v44 = vsel %vm293_vm12, %v75_v35, %v92_v31 }
  0x1d   :  { %v115_v45 = vsel %vm297_vm13, %v99_v36, %v106_v33  ;;  %vm110_vm14 = vcmp.le.f32.partialorder %v108_v37, %v100_v44  ;;  %vm112_vm6 = vcmp.ne.f32.partialorder %v100_v44, %v100_v44 }
  0x1e   :  { %vm125_vm1 = vcmp.le.f32.partialorder %v122_v39, %v115_v45  ;;  %vm127_vm4 = vcmp.ne.f32.partialorder %v115_v45, %v115_v45  ;;  %vm305_vm7 = vmor %vm110_vm14, %vm112_vm6  ;;  %vm377_vm14 = vcmask 1042434  }
  0x1f   :  { %vm309_vm0 = vmor %vm125_vm1, %vm127_vm4  ;;  %v116_v49 = vsel %vm305_vm7, %v100_v44, %v108_v37  ;;  %vm376_vm1 = vcmask 1040384   ;;  %v81_v56 = vsel %vm377_vm14, %v78_v41, %v79_v42 }
  0x20   :  { %v131_v52 = vsel %vm309_vm0, %v115_v45, %v122_v39  ;;  %vm126_vm5 = vcmp.le.f32.partialorder %v124_v46, %v116_v49  ;;  %vm128_vm8 = vcmp.ne.f32.partialorder %v116_v49, %v116_v49  ;;  %v80_v55 = vsel %vm376_vm1, %v32_v32, %v77_v38  ;;  %vm380_vm4 = vmor %vm270_vm10, %vm274_vm11 }
  0x21   :  { %139 = vst [vmem:[#allocation1] ss:$2 sm:$0xff] %v131_v52  ;;  %vm319_vm6 = vmor %vm126_vm5, %vm128_vm8  ;;  %v82_v58 = vsel %vm379_vm3, %v80_v55, %v81_v56  ;;  %v88_v62 = vsel %vm380_vm4, %v86_v59, 0 }
  0x22   :  { %v132_v54 = vsel %vm319_vm6, %v116_v49, %v124_v46  ;;  %v87_v60 = vsel %vm264_vm9, %v82_v58, 0  ;;  %v104_v1 = vsel %vm293_vm12, %v88_v62, 1 }
  0x23   :  { %141 = vst [vmem:[#allocation1 + $0x1] ss:$2 sm:$0xff] %v132_v54  ;;  %v103_v61 = vsel %vm282_vm15, %v87_v60, 1  ;;  %v120_v3 = vsel %vm305_vm7, %v104_v1, 2 }
  0x24   :  { %v119_v0 = vsel %vm297_vm13, %v103_v61, 2  ;;  %v136_v4 = vsel %vm319_vm6, %v120_v3, 3 }
  0x25   :  { %v135_v2 = vsel %vm309_vm0, %v119_v0, 3 }
  0x2a   :  { %v142_v63 = vld [vmem:[#allocation1] sm:$0xff] }
  0x2b   :  { %144 = vst [vmem:[#allocation2] sm:$0xf] %v142_v63 }
  0x2c   :  { %145 = vst [vmem:[#allocation1] ss:$2 sm:$0xff] %v135_v2 }
  0x2d   :  { %147 = vst [vmem:[#allocation1 + $0x1] ss:$2 sm:$0xff] %v136_v4 }
  0x34   :  { %v148_v5 = vld [vmem:[#allocation1] sm:$0xff] }
  0x35   :  { %149 = vst [vmem:[#allocation3] sm:$0xf] %v148_v5 }
  0x36   :  { %153 = vst [vmem:[#allocation1] ss:$2 sm:$0xff] %v135_v2 }
  0x37   :  { %155 = vst [vmem:[#allocation1 + $0x1] ss:$2 sm:$0xff] %v136_v4 }
  0x3e   :  { %v156_v6 = vld [vmem:[#allocation1] sm:$0xff] }
  0x3f   :  { %157 = vst [vmem:[#allocation7] sm:$0xf] %v156_v6 }
  0x40   :  { %168 = dma.vmem_to_hbm [thread:$0]  %s164_s13, 64, %s166_s16, [#allocation6]  }
  0x41   :  { %231 = dma.done.wait [#allocation6], 64  }
  0x42   :  { %232 = vsyncadd [#allocation6], 4294967232 }
  0x43   :  { %173 = vsyncpa [#allocation5], 1 }
  0x44   :  { %174 = vsyncpa [#allocation6], 1 }

</bundles_post_ra>
